<compile_context>
chip_gen: v6e
topology: v6e:2x2x1
jax: 0.10.0
libtpu: 0.0.40
codegen_flags: <defaults>
</compile_context>

<pallas_src>
import jax
import jax.numpy as jnp
from jax.experimental import pallas as pl
from jax.experimental.pallas import tpu as pltpu


def build_positional_encoding(context_size: int, embedding_size: int,
                              dtype=jnp.float32) -> jnp.ndarray:
    """Deterministic PE matrix, exactly mirroring the PyTorch construction.

    Build it in the model dtype at init so the forward pass never pays a
    per-call cast (wrapper-side prep anti-pattern).
    """
    positions = jnp.arange(context_size, dtype=jnp.float32)           # (S,)
    dimensions = jnp.arange(embedding_size, dtype=jnp.float32)        # (E,)
    exponent = jnp.floor(dimensions / 2.0) * 2.0 / embedding_size     # dims // 2 * 2 / E
    divisor = jnp.power(10000.0, exponent)                            # (E,)
    angle_rates = positions[:, None] / divisor[None, :]               # (S, E)
    even_mask = (jnp.arange(embedding_size) % 2) == 0                 # 0, 2, 4, ...
    pe = jnp.where(even_mask[None, :], jnp.sin(angle_rates), jnp.cos(angle_rates))
    return pe.astype(dtype)


def _pe_add_kernel(pe_ref, x_ref, o_ref):
    # pe_ref: (TR, L); x_ref / o_ref: (TB, TR, L). PE broadcasts over the
    # leading batch-tile dim (TB is usually 1; >1 only for tiny-S*E shapes).
    o_ref[...] = (x_ref[...] + pe_ref[...]).astype(o_ref.dtype)


_LANE_CANDIDATES = (4096, 2048, 1024, 512, 256, 128)


def _default_budgets():
    """Generation-aware (max_tile_bytes, vmem_limit_bytes)."""
    try:
        info = pltpu.get_tpu_info()
        vmem_cap = int(getattr(info, "vmem_capacity_bytes", 64 * 1024 * 1024))
    except Exception:  # not on a TPU device / interpret mode
        vmem_cap = 64 * 1024 * 1024
    # Leave ~25% physical headroom; ~6 live tiles (2x x, 2x out, 2x PE) + slack.
    vmem_limit = min((vmem_cap * 3) // 4, 96 * 1024 * 1024)
    max_tile_bytes = min(vmem_limit // 8, 8 * 1024 * 1024)
    return max_tile_bytes, vmem_limit


def _choose_lane_layout(se_pad: int):
    """Fold a (padded, multiple-of-128) flattened trailing dim into (R, L)."""
    for cand in _LANE_CANDIDATES:
        if se_pad % cand == 0:
            return se_pad // cand, cand
    return se_pad // 128, 128  # unreachable: se_pad is a multiple of 128


def _pick_row_tile(R: int, max_rows: int, sub: int) -> int:
    """Largest row tile that fits the budget; prefers a divisor of R so the
    final block is never padded/masked. Always returns R or a multiple of
    `sub` (itself a multiple of 8), satisfying the (8, 128) layout rule."""
    if R <= max_rows or R <= sub:
        return R
    limit = min(max_rows, R)
    cand = (limit // sub) * sub
    while cand >= sub:
        if R % cand == 0:
            return cand
        cand -= sub
    # No sub-multiple divisor fits: accept a (masked) tail block instead.
    return max(sub, (limit // sub) * sub)


def positional_encoding_forward(x: jnp.ndarray, pe: jnp.ndarray,
                                *, max_tile_bytes: int | None = None,
                                vmem_limit_bytes: int | None = None,
                                donate_x: bool = False) -> jnp.ndarray:
    """x: (B, S, E); pe: (S, E). Returns pe + x broadcast over the batch dim."""
    B, S, E = x.shape
    assert pe.shape == (S, E)
    if pe.dtype != x.dtype:
        pe = pe.astype(x.dtype)  # no-op when PE was built in the model dtype

    auto_tile, auto_limit = _default_budgets()
    if max_tile_bytes is None:
        max_tile_bytes = auto_tile
    if vmem_limit_bytes is None:
        vmem_limit_bytes = auto_limit

    itemsize = jnp.dtype(x.dtype).itemsize

    # ---- Lane-dense folding of the trailing dims (pad to 128 if needed). ----
    SE = S * E
    SE_pad = ((SE + 127) // 128) * 128
    R, L = _choose_lane_layout(SE_pad)

    xf = x.reshape(B, SE)
    pef = pe.reshape(SE)
    if SE_pad != SE:
        # Cheap XLA pad so every kernel store is a full-width vst; sliced off below.
        xf = jnp.pad(xf, ((0, 0), (0, SE_pad - SE)))
        pef = jnp.pad(pef, ((0, SE_pad - SE),))
    x3 = xf.reshape(B, R, L)
    pe2 = pef.reshape(R, L)

    # ---- Row tile: dtype-aware sublane packing (f32:8, bf16:16, int8:32). ----
    sub = max(8, (8 * 4) // itemsize)
    max_rows = max(1, max_tile_bytes // (L * itemsize))
    TR = _pick_row_tile(R, max_rows, sub)

    # ---- Batch tile: only when one (R, L) slab is far below the budget. ----
    if TR == R:
        row_bytes = TR * L * itemsize
        cap = max(1, min(B, max_tile_bytes // max(1, row_bytes)))
        TB = 1
        for d in range(cap, 0, -1):        # largest divisor of B -> no tail block
            if B % d == 0:
                TB = d
                break
    else:
        TB = 1

    # Batch axis innermost: PE block index depends only on the outer (row)
    # axis, so the PE tile stays resident across the whole inner batch loop.
    grid = (pl.cdiv(R, TR), pl.cdiv(B, TB))

    extra = {}
    if donate_x:
        # Alias x3 (input index 1) to the output: saves B*S*E of HBM footprint
        # when the caller donates x. Bandwidth is unchanged.
        extra["input_output_aliases"] = {1: 0}

    out3 = pl.pallas_call(
        _pe_add_kernel,
        out_shape=jax.ShapeDtypeStruct((B, R, L), x.dtype),
        grid_spec=pltpu.PrefetchScalarGridSpec(
            num_scalar_prefetch=0,
            grid=grid,
            in_specs=[
                # PE: shared across the batch; re-DMA'd only when the row tile changes.
                pl.BlockSpec((TR, L), lambda j, b: (j, 0)),
                # x: (batch-tile, row-tile, lane) slab per grid step.
                pl.BlockSpec((TB, TR, L), lambda j, b: (b, j, 0)),
            ],
            out_specs=pl.BlockSpec((TB, TR, L), lambda j, b: (b, j, 0)),
        ),
        compiler_params=pltpu.CompilerParams(
            dimension_semantics=("parallel", "parallel"),
            vmem_limit_bytes=int(vmem_limit_bytes),
        ),
        **extra,
    )(pe2, x3)

    out = out3.reshape(B, SE_pad)
    if SE_pad != SE:
        out = out[:, :SE]
    return out.reshape(B, S, E)


if __name__ == "__main__":
    key = jax.random.PRNGKey(0)
    k1, k2, k3, k4 = jax.random.split(key, 4)

    # 1) Small module-consistent shape: (batch=2, context=8, embedding=32), f32.
    B, S, E = 2, 8, 32
    x = jax.random.normal(k1, (B, S, E), dtype=jnp.float32)
    pe = build_positional_encoding(S, E)
    out = jax.block_until_ready(positional_encoding_forward(x, pe))
    ref = pe[None, :, :] + x
    assert out.shape == (B, S, E)
    assert jnp.allclose(out, ref, atol=1e-6), "mismatch vs reference (small shape)"

    # 2) Padding path: S*E not a multiple of 128 (pad-to-128 + slice-off).
    B2, S2, E2 = 2, 8, 24
    x2 = jax.random.normal(k2, (B2, S2, E2), dtype=jnp.float32)
    pe2 = build_positional_encoding(S2, E2)
    out2 = jax.block_until_ready(positional_encoding_forward(x2, pe2))
    assert jnp.allclose(out2, pe2[None, :, :] + x2, atol=1e-6), "mismatch (pad path)"

    # 3) Row-tiled path (forced tiny tile budget): multi-step grid, PE tile
    #    resident across the inner batch axis, divisor-based TR (no tail).
    B3, S3, E3 = 2, 512, 128
    x3 = jax.random.normal(k3, (B3, S3, E3), dtype=jnp.float32)
    pe3 = build_positional_encoding(S3, E3)
    out3 = jax.block_until_ready(
        positional_encoding_forward(x3, pe3,
                                    max_tile_bytes=32 * 1024,
                                    vmem_limit_bytes=16 * 1024 * 1024))
    assert jnp.allclose(out3, pe3[None, :, :] + x3, atol=1e-6), "mismatch (tiled path)"

    # 4) bf16 model dtype: PE built in the model dtype at init (no per-call
    #    cast); 16-row sublane packing; batch folded into the block (TB=2).
    B4, S4, E4 = 2, 16, 32
    x4 = jax.random.normal(k4, (B4, S4, E4), dtype=jnp.float32).astype(jnp.bfloat16)
    pe4 = build_positional_encoding(S4, E4, dtype=jnp.bfloat16)
    out4 = jax.block_until_ready(positional_encoding_forward(x4, pe4))
    ref4 = pe4[None, :, :] + x4
    assert jnp.allclose(out4.astype(jnp.float32), ref4.astype(jnp.float32),
                        atol=1e-2), "mismatch (bf16 path)"

    print("KERNEL_OK")
</pallas_src>

<mosaic_0001>
module attributes {stable_mosaic.version = 11 : i64} {
  func.func @_pe_add_kernel(%arg0: i32, %arg1: i32, %arg2: memref<1x256xf32, #tpu.memory_space<vmem>>, %arg3: memref<2x1x256xf32, #tpu.memory_space<vmem>>, %arg4: memref<2x1x256xf32, #tpu.memory_space<vmem>>) attributes {dimension_semantics = [#tpu.dimension_semantics<parallel>, #tpu.dimension_semantics<parallel>], iteration_bounds = array<i64: 1, 1>, scalar_prefetch = 0 : i64, scratch_operands = 0 : i64, tpu.core_type = #tpu.core_type<tc>, window_params = [{transform_indices = @transform_0, window_bounds = array<i64: 1, 256>}, {transform_indices = @transform_1, window_bounds = array<i64: 2, 1, 256>}, {transform_indices = @transform_2, window_bounds = array<i64: 2, 1, 256>}]} {
    %c0 = arith.constant 0 : index
    %c0_0 = arith.constant 0 : index
    %c0_1 = arith.constant 0 : index
    %0 = vector.load %arg3[%c0, %c0_0, %c0_1] : memref<2x1x256xf32, #tpu.memory_space<vmem>>, vector<2x1x256xf32>
    %c0_2 = arith.constant 0 : index
    %c0_3 = arith.constant 0 : index
    %1 = vector.load %arg2[%c0_2, %c0_3] : memref<1x256xf32, #tpu.memory_space<vmem>>, vector<1x256xf32>
    %2 = vector.shape_cast %1 : vector<1x256xf32> to vector<1x1x256xf32>
    %3 = vector.broadcast %2 : vector<1x1x256xf32> to vector<2x1x256xf32>
    %4 = arith.addf %0, %3 : vector<2x1x256xf32>
    %c0_4 = arith.constant 0 : index
    %c0_5 = arith.constant 0 : index
    %c0_6 = arith.constant 0 : index
    %5 = vector.load %arg4[%c0_4, %c0_5, %c0_6] : memref<2x1x256xf32, #tpu.memory_space<vmem>>, vector<2x1x256xf32>
    tpu.vector_store %arg4[%c0_4, %c0_5, %c0_6], %4 {strides = array<i32>} : memref<2x1x256xf32, #tpu.memory_space<vmem>>, vector<2x1x256xf32>,
    return
  }
  func.func @transform_0(%arg0: i32, %arg1: i32) -> (i32, i32) {
    %c0_i32 = arith.constant 0 : i32
    %c0_i32_0 = arith.constant 0 : i32
    return %arg0, %c0_i32 : i32, i32
  }
  func.func @transform_1(%arg0: i32, %arg1: i32) -> (i32, i32, i32) {
    %c0_i32 = arith.constant 0 : i32
    %c0_i32_0 = arith.constant 0 : i32
    return %arg1, %arg0, %c0_i32 : i32, i32, i32
  }
  func.func @transform_2(%arg0: i32, %arg1: i32) -> (i32, i32, i32) {
    %c0_i32 = arith.constant 0 : i32
    %c0_i32_0 = arith.constant 0 : i32
    return %arg1, %arg0, %c0_i32 : i32, i32, i32
  }
}

</mosaic_0001>

<bundles_post_ra>
// kernel: tpu_custom_call.1
= control target key start
LH: loop header
LB: loop body
LE: loop exit
PB: predicated region body
PF: predicated region fallthrough
CT: control target
= control target key end

     0   :  { %7 = vsyncpa [#allocation3], 0  ;;  %s167_s0 = inlined_call_operand.hbm [shape: f32[1,256], index: 0, kind: input, shape index: {}]   ;;  %s168_s1 = inlined_call_operand.hbm [shape: f32[2,1,256], index: 1, kind: input, shape index: {}]   ;;  %s169_s2 = inlined_call_operand.hbm [shape: f32[2,1,256], index: 2, kind: output, shape index: {}]  }
   0x1   :  { %8 = vsyncpa [#allocation6], 0 }
   0x2   :  { %9 = vsyncpa [#allocation4], 0  ;;  %s138_s9 = smov [#allocation2]   ;;  %s139_s11 = smov [#allocation5]  }
   0x3   :  { %s16_s10 = sshll.u32 %s138_s9, 4  ;;  %s25_s12 = sshll.u32 %s139_s11, 4  ;;  %s17_s10 = int_to_ptr.vmem [resolvable:$true] %s16_s10  ;;  %s26_s12 = int_to_ptr.vmem [resolvable:$true] %s25_s12 }
   0x4   :  { %s80_s13 = scalar_lea.vmem %s17_s10, 32  ;;  %p85_p1 = scmp.lt.s32.totalorder %s17_s10, %s17_s10 }
   0x5   :  { %p81_p0 = scmp.ne.s32.totalorder %s17_s10, %s80_s13  ;;  %p86_p2 = scmp.lt.s32.totalorder %s80_s13, %s80_s13 }
   0x7   :  { %p87_p3 = por %p86_p2, %p85_p1 }
   0x9   :  { %p88_p4 = pnand %p87_p3, %p81_p0 }
   0xb   :  { %91 = shalt.err (!%p88_p4)
}
   0xc   :  { %19 = dma.hbm_to_vmem [thread:$0]  %s167_s0, 32, %s17_s10, [#allocation3]  }
   0xd   :  { %s100_s16 = scalar_lea.vmem %s26_s12, 64  ;;  %p105_p6 = scmp.lt.s32.totalorder %s26_s12, %s26_s12 }
   0xe   :  { %p101_p5 = scmp.ne.s32.totalorder %s26_s12, %s100_s16  ;;  %p106_p7 = scmp.lt.s32.totalorder %s100_s16, %s100_s16 }
  0x10   :  { %p107_p8 = por %p106_p7, %p105_p6 }
  0x12   :  { %p108_p9 = pnand %p107_p8, %p101_p5 }
  0x14   :  { %111 = shalt.err (!%p108_p9)
}
  0x15   :  { %s140_s17 = smov 32   ;;  %s141_s18 = smov 2  }
  0x16   :  { %31 = dma.hbm_to_vmem [thread:$0]  %s168_s1, 64, %s26_s12, [#allocation6], %s140_s17, %s140_s17, %s141_s18  }
  0x17   :  { %132 = dma.done.wait [#allocation3], 32  }
  0x18   :  { %133 = vsyncadd [#allocation3], 4294967264 }
  0x19   :  { %134 = dma.done.wait [#allocation6], 64  }
  0x1a   :  { %135 = vsyncadd [#allocation6], 4294967232  ;;  %v43_v0 = vlaneseq  ;;  %s142_s21 = smov [#allocation7]   ;;  %v38_v1 = vld [vmem:[#allocation5] sm:$0x3] }
  0x1b   :  { %s54_s0 = sshll.u32 %s142_s21, 4  ;;  %v40_v2 = vld [vmem:[#allocation2] sm:$0x3]  ;;  %v39_v3 = vld [vmem:[#allocation5 + $0x2] sm:$0x3]  ;;  %s55_s0 = int_to_ptr.vmem [resolvable:$true] %s54_s0 }
  0x1c   :  { %vm45_vm0 = vcmp.lt.s32.totalorder %v43_v0, 256  ;;  %v41_v4 = vadd.f32 %v40_v2, %v38_v1  ;;  %v42_v5 = vadd.f32 %v40_v2, %v39_v3  ;;  %s112_s22 = scalar_lea.vmem %s55_s0, 64  ;;  %p117_p11 = scmp.lt.s32.totalorder %s55_s0, %s55_s0 }
  0x1d   :  { %p113_p10 = scmp.ne.s32.totalorder %s55_s0, %s112_s22  ;;  %p118_p12 = scmp.lt.s32.totalorder %s112_s22, %s112_s22 }
  0x1e   :  { %47 = vst.msk [vmem:[#allocation7] sm:$0x3] %vm45_vm0, %v41_v4  ;;  %48 = vst.msk [vmem:[#allocation7 + $0x2] sm:$0x3] %vm45_vm0, %v42_v5 }
  0x1f   :  { %p119_p13 = por %p118_p12, %p117_p11 }
  0x21   :  { %p120_p0 = pnand %p119_p13, %p113_p10 }
  0x23   :  { %123 = shalt.err (!%p120_p0)
}
  0x24   :  { %60 = dma.vmem_to_hbm [thread:$0]  %s55_s0, 64, %s169_s2, [#allocation4], %s140_s17, %s140_s17, %s141_s18  }
  0x25   :  { %136 = dma.done.wait [#allocation4], 64  }
  0x26   :  { %137 = vsyncadd [#allocation4], 4294967232 }
  0x27   :  { %64 = vsyncpa [#allocation3], 1 }
  0x28   :  { %65 = vsyncpa [#allocation6], 1 }
  0x29   :  { %66 = vsyncpa [#allocation4], 1 }

</bundles_post_ra>
